<compile_context>
chip_gen: v7x
topology: tpu7x:2x2x1
jax: 0.10.0
libtpu: 0.0.40
codegen_flags: <defaults>
</compile_context>

<pallas_src>
import functools

import jax
import jax.numpy as jnp
from jax.experimental import pallas as pl
from jax.experimental.pallas import tpu as pltpu


# ---------------------------------------------------------------------------
# In-kernel building blocks (operate on values already resident in VMEM/vregs)
# ---------------------------------------------------------------------------
def _gat_layer(x, edge_mask, w_aug, al_x, bias, *, apply_elu):
    """One GATConv (num_heads=1, DGL semantics).

    w_aug = [W | W @ attn_r^T]  -> proj = [h | er] in one MXU pass.
    al_x  = attn_l @ W^T        -> el = al_x @ x^T (source scores on lanes),
    algebraically identical to <h_j, attn_l>.
    """
    feat = w_aug.shape[1] - 1
    proj = jnp.dot(x, w_aug, preferred_element_type=jnp.float32)   # (N, F+1)
    h = proj[:, :feat]                                             # (N, F)
    er = proj[:, feat:]                                            # (N, 1) dst
    # source-side score laid out on lanes: el[0, j] = <x_j, attn_l @ W^T>
    el = jax.lax.dot_general(al_x, x, (((1,), (1,)), ((), ())),
                             preferred_element_type=jnp.float32)   # (1, N)

    logits = er + el                                               # (N, N)
    logits = jnp.where(logits > 0, logits, 0.2 * logits)           # leaky_relu

    neg_inf = jnp.float32(-1e30)
    masked = jnp.where(edge_mask, logits, neg_inf)
    m = jnp.max(masked, axis=-1, keepdims=True)
    p = jnp.where(edge_mask, jnp.exp(masked - m), 0.0)
    denom = jnp.sum(p, axis=-1, keepdims=True)
    # Guard zero in-degree rows against 0/0 (allow_zero_in_degree=True).
    inv = pl.reciprocal(jnp.maximum(denom, jnp.float32(1e-20)), approx=True)

    # Aggregate with unnormalised weights; fold 1/denom in as a row scale.
    rst = jnp.dot(p, h, preferred_element_type=jnp.float32) * inv + bias
    if apply_elu:
        # F.elu. (exp(x)-1 rather than expm1: abs. error <= ~1 ulp of 1.0.)
        rst = jnp.where(rst > 0, rst, jnp.exp(jnp.minimum(rst, 0.0)) - 1.0)
    return rst


def _double_batchnorm(x, gamma, beta):
    """BatchNorm1d (training mode) applied twice with the same params, folded.

    After BN1, the batch mean is beta and the batch var is g1^2 * var, so
    BN2 composes into a single affine on the centered input.  Exact in real
    arithmetic; saves one reduction pair + one elementwise pass per layer.
    """
    n = x.shape[0]
    inv_n = jnp.float32(1.0 / n)
    mean = jnp.sum(x, axis=0, keepdims=True) * inv_n
    xc = x - mean
    var = jnp.sum(xc * xc, axis=0, keepdims=True) * inv_n
    eps = jnp.float32(1e-5)
    g1 = gamma * jax.lax.rsqrt(var + eps)            # BN1: y = g1*xc + beta
    scale = gamma * g1 * jax.lax.rsqrt(g1 * g1 * var + eps)   # BN2 folded in
    return scale * xc + beta


def _encoder_kernel(*refs, num_hidden):
    # refs = (adj, x, w_aug_0..w_aug_{L-1}, w_aug_mu, vec_pack, out)
    adj_ref, x_ref = refs[0], refs[1]
    w_refs = refs[2:2 + num_hidden + 1]
    vec_ref = refs[2 + num_hidden + 1]
    o_ref = refs[-1]

    edge_mask = adj_ref[...] != 0            # integer-domain compare, != 0
    vec = vec_ref[...]                       # one load; static slices below

    x = x_ref[...]
    for i in range(num_hidden):
        w_aug = w_refs[i][...]
        fin = x.shape[1]
        fout = w_aug.shape[1] - 1
        r0 = 4 * i
        al_x = vec[r0 + 0:r0 + 1, :fin]
        bias = vec[r0 + 1:r0 + 2, :fout]
        gamma = vec[r0 + 2:r0 + 3, :fout]
        beta = vec[r0 + 3:r0 + 4, :fout]
        x = _gat_layer(x, edge_mask, w_aug, al_x, bias, apply_elu=True)
        x = _double_batchnorm(x, gamma, beta)   # BN applied twice (folded)

    w_aug = w_refs[num_hidden][...]
    fin = x.shape[1]
    fout = w_aug.shape[1] - 1
    r0 = 4 * num_hidden
    al_x = vec[r0 + 0:r0 + 1, :fin]
    bias = vec[r0 + 1:r0 + 2, :fout]
    o_ref[...] = _gat_layer(x, edge_mask, w_aug, al_x, bias, apply_elu=False)


# ---------------------------------------------------------------------------
# One-time parameter preparation (NOT part of the per-call forward)
# ---------------------------------------------------------------------------
def prepare_params(params):
    """Fold attn_r into the fc weight and pack all per-layer vectors.

    Returns (w_augs, vec_pack) where
      w_augs[i] = [W_i | W_i @ attn_r_i^T]                  (Fin_i, Fout_i + 1)
      vec_pack rows per hidden layer i (padded to Fmax):
        [attn_l_i @ W_i^T, bias_i, gamma_i, beta_i], then [attn_l_mu @ W_mu^T,
        bias_mu] for the enc_mu layer.
    """
    hidden = params["hidden"]
    w_mu, b_mu, al_mu, ar_mu = params["mu"]

    dims = []
    for (w, _, _, _, _, _) in hidden:
        dims += [w.shape[0], w.shape[1]]
    dims += [w_mu.shape[0], w_mu.shape[1]]
    fmax = max(dims)

    def pad(v):
        return jnp.pad(v, ((0, 0), (0, fmax - v.shape[1])))

    w_augs, rows = [], []
    for (w, b, al, ar, gamma, beta) in hidden:
        w_augs.append(jnp.concatenate([w, w @ ar.T], axis=1))
        rows += [pad(al @ w.T), pad(b), pad(gamma), pad(beta)]
    w_augs.append(jnp.concatenate([w_mu, w_mu @ ar_mu.T], axis=1))
    rows += [pad(al_mu @ w_mu.T), pad(b_mu)]
    vec_pack = jnp.concatenate(rows, axis=0)
    return tuple(w_augs), vec_pack


# ---------------------------------------------------------------------------
# Wrapper: single fused pallas_call, batch-of-graphs grid ("parallel")
# ---------------------------------------------------------------------------
def gat_encoder_forward(adj, x, w_augs, vec_pack):
    """adj: (B, N, N) int32, adj[b, i, j] != 0 iff edge j -> i in graph b.
    x: (B, N, Fin) float32.  Each grid step handles one graph, so per-graph
    BatchNorm statistics match calling the reference forward per graph.
    """
    b, n, _ = adj.shape
    fin = x.shape[-1]
    num_hidden = len(w_augs) - 1
    out_dim = w_augs[-1].shape[1] - 1

    # Batched activations: one graph per grid step (batch dim squeezed).
    adj_spec = pl.BlockSpec((None, n, n), lambda g: (g, 0, 0))
    x_spec = pl.BlockSpec((None, n, fin), lambda g: (g, 0, 0))
    out_spec = pl.BlockSpec((None, n, out_dim), lambda g: (g, 0, 0))
    # Parameters: full-array VMEM-resident blocks, same for every grid step.
    w_specs = [pl.BlockSpec(w.shape, lambda g: (0, 0)) for w in w_augs]
    vec_spec = pl.BlockSpec(vec_pack.shape, lambda g: (0, 0))

    kernel = functools.partial(_encoder_kernel, num_hidden=num_hidden)
    return pl.pallas_call(
        kernel,
        out_shape=jax.ShapeDtypeStruct((b, n, out_dim), jnp.float32),
        grid=(b,),
        in_specs=[adj_spec, x_spec] + w_specs + [vec_spec],
        out_specs=out_spec,
        compiler_params=pltpu.CompilerParams(
            dimension_semantics=("parallel",),
            vmem_limit_bytes=32 * 1024 * 1024,
        ),
    )(adj, x, *w_augs, vec_pack)


# ---------------------------------------------------------------------------
# Deterministic parameter init (shapes per GATConv / BatchNorm1d __init__)
# ---------------------------------------------------------------------------
def init_params(key, input_dim, hidden_dims, output_dim):
    dims = [input_dim] + list(hidden_dims)
    params = {"hidden": [], "mu": None}
    for i in range(len(hidden_dims)):
        key, k1, k2, k3 = jax.random.split(key, 4)
        fin, fout = dims[i], dims[i + 1]
        w = jax.random.normal(k1, (fin, fout), jnp.float32) / jnp.sqrt(
            jnp.float32(fin))
        al = jax.random.normal(k2, (1, fout), jnp.float32) * 0.1
        ar = jax.random.normal(k3, (1, fout), jnp.float32) * 0.1
        b = jnp.zeros((1, fout), jnp.float32)
        gamma = jnp.ones((1, fout), jnp.float32)   # BatchNorm1d weight init
        beta = jnp.zeros((1, fout), jnp.float32)   # BatchNorm1d bias init
        params["hidden"].append((w, b, al, ar, gamma, beta))
    key, k1, k2, k3 = jax.random.split(key, 4)
    fin = hidden_dims[-1]
    w = jax.random.normal(k1, (fin, output_dim), jnp.float32) / jnp.sqrt(
        jnp.float32(fin))
    al = jax.random.normal(k2, (1, output_dim), jnp.float32) * 0.1
    ar = jax.random.normal(k3, (1, output_dim), jnp.float32) * 0.1
    b = jnp.zeros((1, output_dim), jnp.float32)
    params["mu"] = (w, b, al, ar)
    return params


if __name__ == "__main__":
    B = 2            # batch of graphs -> "parallel" grid axis (2 TCs on v7x)
    N = 16
    input_dim = 8
    hidden_dims = [32, 16]
    output_dim = 8

    key = jax.random.PRNGKey(0)
    key, kx, ka, kp = jax.random.split(key, 4)

    x = jax.random.normal(kx, (B, N, input_dim), jnp.float32)
    # random dense graphs with guaranteed self-loops (keeps the edge softmax
    # well defined even though zero in-degree is also handled in-kernel).
    adj = ((jax.random.uniform(ka, (B, N, N)) > 0.6)
           | jnp.eye(N, dtype=bool)[None]).astype(jnp.int32)

    params = init_params(kp, input_dim, hidden_dims, output_dim)
    # One-time prep: augmented weights + packed vectors (outside the forward).
    w_augs, vec_pack = prepare_params(params)

    fwd = jax.jit(gat_encoder_forward)
    out = fwd(adj, x, w_augs, vec_pack)
    out = jax.block_until_ready(out)
    assert out.shape == (B, N, output_dim)
    assert bool(jnp.all(jnp.isfinite(out)))
    print("KERNEL_OK")
</pallas_src>

<mosaic_0001>
module attributes {stable_mosaic.version = 11 : i64} {
  func.func @_encoder_kernel(%arg0: i32, %arg1: memref<1x16x16xi32, #tpu.memory_space<vmem>>, %arg2: memref<1x16x8xf32, #tpu.memory_space<vmem>>, %arg3: memref<8x33xf32, #tpu.memory_space<vmem>>, %arg4: memref<32x17xf32, #tpu.memory_space<vmem>>, %arg5: memref<16x9xf32, #tpu.memory_space<vmem>>, %arg6: memref<10x32xf32, #tpu.memory_space<vmem>>, %arg7: memref<1x16x8xf32, #tpu.memory_space<vmem>>) attributes {dimension_semantics = [#tpu.dimension_semantics<parallel>], iteration_bounds = array<i64: 2>, scalar_prefetch = 0 : i64, scratch_operands = 0 : i64, tpu.core_type = #tpu.core_type<tc>, window_params = [{transform_indices = @transform_0, window_bounds = array<i64: 1, 16, 16>}, {transform_indices = @transform_1, window_bounds = array<i64: 1, 16, 8>}, {pipeline_mode = #tpu.pipeline_mode<synchronous>, transform_indices = @transform_2, window_bounds = array<i64: 8, 33>}, {pipeline_mode = #tpu.pipeline_mode<synchronous>, transform_indices = @transform_3, window_bounds = array<i64: 32, 17>}, {pipeline_mode = #tpu.pipeline_mode<synchronous>, transform_indices = @transform_4, window_bounds = array<i64: 16, 9>}, {pipeline_mode = #tpu.pipeline_mode<synchronous>, transform_indices = @transform_5, window_bounds = array<i64: 10, 32>}, {transform_indices = @transform_6, window_bounds = array<i64: 1, 16, 8>}]} {
    %c0 = arith.constant 0 : index
    %c0_0 = arith.constant 0 : index
    %c0_1 = arith.constant 0 : index
    %0 = vector.load %arg1[%c0, %c0_0, %c0_1] : memref<1x16x16xi32, #tpu.memory_space<vmem>>, vector<1x16x16xi32>
    %1 = vector.shape_cast %0 : vector<1x16x16xi32> to vector<16x16xi32>
    %c0_i32 = arith.constant 0 : i32
    %2 = vector.broadcast %c0_i32 : i32 to vector<16x16xi32>
    %3 = arith.cmpi ne, %1, %2 : vector<16x16xi32>
    %c0_2 = arith.constant 0 : index
    %c0_3 = arith.constant 0 : index
    %4 = vector.load %arg6[%c0_2, %c0_3] : memref<10x32xf32, #tpu.memory_space<vmem>>, vector<10x32xf32>
    %c0_4 = arith.constant 0 : index
    %c0_5 = arith.constant 0 : index
    %c0_6 = arith.constant 0 : index
    %5 = vector.load %arg2[%c0_4, %c0_5, %c0_6] : memref<1x16x8xf32, #tpu.memory_space<vmem>>, vector<1x16x8xf32>
    %6 = vector.shape_cast %5 : vector<1x16x8xf32> to vector<16x8xf32>
    %c0_7 = arith.constant 0 : index
    %c0_8 = arith.constant 0 : index
    %7 = vector.load %arg3[%c0_7, %c0_8] : memref<8x33xf32, #tpu.memory_space<vmem>>, vector<8x33xf32>
    %8 = vector.extract_strided_slice %4 {offsets = [0, 0], sizes = [1, 8], strides = [1, 1]} : vector<10x32xf32> to vector<1x8xf32>
    %9 = vector.extract_strided_slice %4 {offsets = [1, 0], sizes = [1, 32], strides = [1, 1]} : vector<10x32xf32> to vector<1x32xf32>
    %10 = vector.extract_strided_slice %4 {offsets = [2, 0], sizes = [1, 32], strides = [1, 1]} : vector<10x32xf32> to vector<1x32xf32>
    %11 = vector.extract_strided_slice %4 {offsets = [3, 0], sizes = [1, 32], strides = [1, 1]} : vector<10x32xf32> to vector<1x32xf32>
    %cst = arith.constant dense<0.000000e+00> : vector<16x33xf32>
    %12 = tpu.matmul %6, %7, %cst {dimension_numbers = #tpu.dot_dimension_numbers<[1], [0], [0], [1], [0, 0, 1, 1], [], []>} : vector<16x8xf32>, vector<8x33xf32>, vector<16x33xf32> -> vector<16x33xf32>
    %13 = vector.extract_strided_slice %12 {offsets = [0, 0], sizes = [16, 32], strides = [1, 1]} : vector<16x33xf32> to vector<16x32xf32>
    %14 = vector.extract_strided_slice %12 {offsets = [0, 32], sizes = [16, 1], strides = [1, 1]} : vector<16x33xf32> to vector<16x1xf32>
    %cst_9 = arith.constant dense<0.000000e+00> : vector<1x16xf32>
    %15 = tpu.matmul %8, %6, %cst_9 {dimension_numbers = #tpu.dot_dimension_numbers<[1], [1], [0], [0], [0, 0, 1, 0], [], []>} : vector<1x8xf32>, vector<16x8xf32>, vector<1x16xf32> -> vector<1x16xf32>
    %16 = vector.broadcast %14 : vector<16x1xf32> to vector<16x16xf32>
    %17 = vector.broadcast %15 : vector<1x16xf32> to vector<16x16xf32>
    %18 = arith.addf %16, %17 : vector<16x16xf32>
    %cst_10 = arith.constant 0.000000e+00 : f32
    %19 = vector.broadcast %cst_10 : f32 to vector<16x16xf32>
    %20 = arith.cmpf ogt, %18, %19 : vector<16x16xf32>
    %cst_11 = arith.constant 2.000000e-01 : f32
    %21 = vector.broadcast %cst_11 : f32 to vector<16x16xf32>
    %22 = arith.mulf %21, %18 : vector<16x16xf32>
    %23 = arith.select %20, %18, %22 : vector<16x16xi1>, vector<16x16xf32>
    %cst_12 = arith.constant -1.000000e+30 : f32
    %24 = vector.broadcast %cst_12 : f32 to vector<16x16xf32>
    %25 = arith.select %3, %23, %24 : vector<16x16xi1>, vector<16x16xf32>
    %cst_13 = arith.constant dense<0xFF800000> : vector<16xf32>
    %26 = vector.multi_reduction <maximumf>, %25, %cst_13 [1] : vector<16x16xf32> to vector<16xf32>
    %27 = vector.shape_cast %26 : vector<16xf32> to vector<16x1xf32>
    %28 = vector.broadcast %27 : vector<16x1xf32> to vector<16x16xf32>
    %29 = arith.subf %25, %28 : vector<16x16xf32>
    %30 = math.exp %29 : vector<16x16xf32>
    %cst_14 = arith.constant 0.000000e+00 : f32
    %31 = vector.broadcast %cst_14 : f32 to vector<16x16xf32>
    %32 = arith.select %3, %30, %31 : vector<16x16xi1>, vector<16x16xf32>
    %cst_15 = arith.constant dense<0.000000e+00> : vector<16xf32>
    %33 = vector.multi_reduction <add>, %32, %cst_15 [1] : vector<16x16xf32> to vector<16xf32>
    %34 = vector.shape_cast %33 : vector<16xf32> to vector<16x1xf32>
    %cst_16 = arith.constant 9.99999968E-21 : f32
    %35 = vector.broadcast %cst_16 : f32 to vector<16x1xf32>
    %36 = arith.maximumf %34, %35 : vector<16x1xf32>
    %37 = tpu.reciprocal %36 {approx = true} : vector<16x1xf32> -> vector<16x1xf32>
    %cst_17 = arith.constant dense<0.000000e+00> : vector<16x32xf32>
    %38 = tpu.matmul %32, %13, %cst_17 {dimension_numbers = #tpu.dot_dimension_numbers<[1], [0], [0], [1], [0, 0, 1, 1], [], []>} : vector<16x16xf32>, vector<16x32xf32>, vector<16x32xf32> -> vector<16x32xf32>
    %39 = vector.broadcast %37 : vector<16x1xf32> to vector<16x32xf32>
    %40 = arith.mulf %38, %39 : vector<16x32xf32>
    %41 = vector.broadcast %9 : vector<1x32xf32> to vector<16x32xf32>
    %42 = arith.addf %40, %41 : vector<16x32xf32>
    %cst_18 = arith.constant 0.000000e+00 : f32
    %43 = vector.broadcast %cst_18 : f32 to vector<16x32xf32>
    %44 = arith.cmpf ogt, %42, %43 : vector<16x32xf32>
    %cst_19 = arith.constant 0.000000e+00 : f32
    %45 = vector.broadcast %cst_19 : f32 to vector<16x32xf32>
    %46 = arith.minimumf %42, %45 : vector<16x32xf32>
    %47 = math.exp %46 : vector<16x32xf32>
    %cst_20 = arith.constant 1.000000e+00 : f32
    %48 = vector.broadcast %cst_20 : f32 to vector<16x32xf32>
    %49 = arith.subf %47, %48 : vector<16x32xf32>
    %50 = arith.select %44, %42, %49 : vector<16x32xi1>, vector<16x32xf32>
    %cst_21 = arith.constant dense<0.000000e+00> : vector<32xf32>
    %51 = vector.multi_reduction <add>, %50, %cst_21 [0] : vector<16x32xf32> to vector<32xf32>
    %52 = vector.shape_cast %51 : vector<32xf32> to vector<1x32xf32>
    %cst_22 = arith.constant 6.250000e-02 : f32
    %53 = vector.broadcast %cst_22 : f32 to vector<1x32xf32>
    %54 = arith.mulf %52, %53 : vector<1x32xf32>
    %55 = vector.broadcast %54 : vector<1x32xf32> to vector<16x32xf32>
    %56 = arith.subf %50, %55 : vector<16x32xf32>
    %57 = arith.mulf %56, %56 : vector<16x32xf32>
    %cst_23 = arith.constant dense<0.000000e+00> : vector<32xf32>
    %58 = vector.multi_reduction <add>, %57, %cst_23 [0] : vector<16x32xf32> to vector<32xf32>
    %59 = vector.shape_cast %58 : vector<32xf32> to vector<1x32xf32>
    %cst_24 = arith.constant 6.250000e-02 : f32
    %60 = vector.broadcast %cst_24 : f32 to vector<1x32xf32>
    %61 = arith.mulf %59, %60 : vector<1x32xf32>
    %cst_25 = arith.constant 9.99999974E-6 : f32
    %62 = vector.broadcast %cst_25 : f32 to vector<1x32xf32>
    %63 = arith.addf %61, %62 : vector<1x32xf32>
    %64 = math.rsqrt %63 : vector<1x32xf32>
    %65 = arith.mulf %10, %64 : vector<1x32xf32>
    %66 = arith.mulf %10, %65 : vector<1x32xf32>
    %67 = arith.mulf %65, %65 : vector<1x32xf32>
    %68 = arith.mulf %67, %61 : vector<1x32xf32>
    %cst_26 = arith.constant 9.99999974E-6 : f32
    %69 = vector.broadcast %cst_26 : f32 to vector<1x32xf32>
    %70 = arith.addf %68, %69 : vector<1x32xf32>
    %71 = math.rsqrt %70 : vector<1x32xf32>
    %72 = arith.mulf %66, %71 : vector<1x32xf32>
    %73 = vector.broadcast %72 : vector<1x32xf32> to vector<16x32xf32>
    %74 = arith.mulf %73, %56 : vector<16x32xf32>
    %75 = vector.broadcast %11 : vector<1x32xf32> to vector<16x32xf32>
    %76 = arith.addf %74, %75 : vector<16x32xf32>
    %c0_27 = arith.constant 0 : index
    %c0_28 = arith.constant 0 : index
    %77 = vector.load %arg4[%c0_27, %c0_28] : memref<32x17xf32, #tpu.memory_space<vmem>>, vector<32x17xf32>
    %78 = vector.extract_strided_slice %4 {offsets = [4, 0], sizes = [1, 32], strides = [1, 1]} : vector<10x32xf32> to vector<1x32xf32>
    %79 = vector.extract_strided_slice %4 {offsets = [5, 0], sizes = [1, 16], strides = [1, 1]} : vector<10x32xf32> to vector<1x16xf32>
    %80 = vector.extract_strided_slice %4 {offsets = [6, 0], sizes = [1, 16], strides = [1, 1]} : vector<10x32xf32> to vector<1x16xf32>
    %81 = vector.extract_strided_slice %4 {offsets = [7, 0], sizes = [1, 16], strides = [1, 1]} : vector<10x32xf32> to vector<1x16xf32>
    %cst_29 = arith.constant dense<0.000000e+00> : vector<16x17xf32>
    %82 = tpu.matmul %76, %77, %cst_29 {dimension_numbers = #tpu.dot_dimension_numbers<[1], [0], [0], [1], [0, 0, 1, 1], [], []>} : vector<16x32xf32>, vector<32x17xf32>, vector<16x17xf32> -> vector<16x17xf32>
    %83 = vector.extract_strided_slice %82 {offsets = [0, 0], sizes = [16, 16], strides = [1, 1]} : vector<16x17xf32> to vector<16x16xf32>
    %84 = vector.extract_strided_slice %82 {offsets = [0, 16], sizes = [16, 1], strides = [1, 1]} : vector<16x17xf32> to vector<16x1xf32>
    %cst_30 = arith.constant dense<0.000000e+00> : vector<1x16xf32>
    %85 = tpu.matmul %78, %76, %cst_30 {dimension_numbers = #tpu.dot_dimension_numbers<[1], [1], [0], [0], [0, 0, 1, 0], [], []>} : vector<1x32xf32>, vector<16x32xf32>, vector<1x16xf32> -> vector<1x16xf32>
    %86 = vector.broadcast %84 : vector<16x1xf32> to vector<16x16xf32>
    %87 = vector.broadcast %85 : vector<1x16xf32> to vector<16x16xf32>
    %88 = arith.addf %86, %87 : vector<16x16xf32>
    %cst_31 = arith.constant 0.000000e+00 : f32
    %89 = vector.broadcast %cst_31 : f32 to vector<16x16xf32>
    %90 = arith.cmpf ogt, %88, %89 : vector<16x16xf32>
    %cst_32 = arith.constant 2.000000e-01 : f32
    %91 = vector.broadcast %cst_32 : f32 to vector<16x16xf32>
    %92 = arith.mulf %91, %88 : vector<16x16xf32>
    %93 = arith.select %90, %88, %92 : vector<16x16xi1>, vector<16x16xf32>
    %cst_33 = arith.constant -1.000000e+30 : f32
    %94 = vector.broadcast %cst_33 : f32 to vector<16x16xf32>
    %95 = arith.select %3, %93, %94 : vector<16x16xi1>, vector<16x16xf32>
    %cst_34 = arith.constant dense<0xFF800000> : vector<16xf32>
    %96 = vector.multi_reduction <maximumf>, %95, %cst_34 [1] : vector<16x16xf32> to vector<16xf32>
    %97 = vector.shape_cast %96 : vector<16xf32> to vector<16x1xf32>
    %98 = vector.broadcast %97 : vector<16x1xf32> to vector<16x16xf32>
    %99 = arith.subf %95, %98 : vector<16x16xf32>
    %100 = math.exp %99 : vector<16x16xf32>
    %cst_35 = arith.constant 0.000000e+00 : f32
    %101 = vector.broadcast %cst_35 : f32 to vector<16x16xf32>
    %102 = arith.select %3, %100, %101 : vector<16x16xi1>, vector<16x16xf32>
    %cst_36 = arith.constant dense<0.000000e+00> : vector<16xf32>
    %103 = vector.multi_reduction <add>, %102, %cst_36 [1] : vector<16x16xf32> to vector<16xf32>
    %104 = vector.shape_cast %103 : vector<16xf32> to vector<16x1xf32>
    %cst_37 = arith.constant 9.99999968E-21 : f32
    %105 = vector.broadcast %cst_37 : f32 to vector<16x1xf32>
    %106 = arith.maximumf %104, %105 : vector<16x1xf32>
    %107 = tpu.reciprocal %106 {approx = true} : vector<16x1xf32> -> vector<16x1xf32>
    %cst_38 = arith.constant dense<0.000000e+00> : vector<16x16xf32>
    %108 = tpu.matmul %102, %83, %cst_38 {dimension_numbers = #tpu.dot_dimension_numbers<[1], [0], [0], [1], [0, 0, 1, 1], [], []>} : vector<16x16xf32>, vector<16x16xf32>, vector<16x16xf32> -> vector<16x16xf32>
    %109 = vector.broadcast %107 : vector<16x1xf32> to vector<16x16xf32>
    %110 = arith.mulf %108, %109 : vector<16x16xf32>
    %111 = vector.broadcast %79 : vector<1x16xf32> to vector<16x16xf32>
    %112 = arith.addf %110, %111 : vector<16x16xf32>
    %cst_39 = arith.constant 0.000000e+00 : f32
    %113 = vector.broadcast %cst_39 : f32 to vector<16x16xf32>
    %114 = arith.cmpf ogt, %112, %113 : vector<16x16xf32>
    %cst_40 = arith.constant 0.000000e+00 : f32
    %115 = vector.broadcast %cst_40 : f32 to vector<16x16xf32>
    %116 = arith.minimumf %112, %115 : vector<16x16xf32>
    %117 = math.exp %116 : vector<16x16xf32>
    %cst_41 = arith.constant 1.000000e+00 : f32
    %118 = vector.broadcast %cst_41 : f32 to vector<16x16xf32>
    %119 = arith.subf %117, %118 : vector<16x16xf32>
    %120 = arith.select %114, %112, %119 : vector<16x16xi1>, vector<16x16xf32>
    %cst_42 = arith.constant dense<0.000000e+00> : vector<16xf32>
    %121 = vector.multi_reduction <add>, %120, %cst_42 [0] : vector<16x16xf32> to vector<16xf32>
    %122 = vector.shape_cast %121 : vector<16xf32> to vector<1x16xf32>
    %cst_43 = arith.constant 6.250000e-02 : f32
    %123 = vector.broadcast %cst_43 : f32 to vector<1x16xf32>
    %124 = arith.mulf %122, %123 : vector<1x16xf32>
    %125 = vector.broadcast %124 : vector<1x16xf32> to vector<16x16xf32>
    %126 = arith.subf %120, %125 : vector<16x16xf32>
    %127 = arith.mulf %126, %126 : vector<16x16xf32>
    %cst_44 = arith.constant dense<0.000000e+00> : vector<16xf32>
    %128 = vector.multi_reduction <add>, %127, %cst_44 [0] : vector<16x16xf32> to vector<16xf32>
    %129 = vector.shape_cast %128 : vector<16xf32> to vector<1x16xf32>
    %cst_45 = arith.constant 6.250000e-02 : f32
    %130 = vector.broadcast %cst_45 : f32 to vector<1x16xf32>
    %131 = arith.mulf %129, %130 : vector<1x16xf32>
    %cst_46 = arith.constant 9.99999974E-6 : f32
    %132 = vector.broadcast %cst_46 : f32 to vector<1x16xf32>
    %133 = arith.addf %131, %132 : vector<1x16xf32>
    %134 = math.rsqrt %133 : vector<1x16xf32>
    %135 = arith.mulf %80, %134 : vector<1x16xf32>
    %136 = arith.mulf %80, %135 : vector<1x16xf32>
    %137 = arith.mulf %135, %135 : vector<1x16xf32>
    %138 = arith.mulf %137, %131 : vector<1x16xf32>
    %cst_47 = arith.constant 9.99999974E-6 : f32
    %139 = vector.broadcast %cst_47 : f32 to vector<1x16xf32>
    %140 = arith.addf %138, %139 : vector<1x16xf32>
    %141 = math.rsqrt %140 : vector<1x16xf32>
    %142 = arith.mulf %136, %141 : vector<1x16xf32>
    %143 = vector.broadcast %142 : vector<1x16xf32> to vector<16x16xf32>
    %144 = arith.mulf %143, %126 : vector<16x16xf32>
    %145 = vector.broadcast %81 : vector<1x16xf32> to vector<16x16xf32>
    %146 = arith.addf %144, %145 : vector<16x16xf32>
    %c0_48 = arith.constant 0 : index
    %c0_49 = arith.constant 0 : index
    %147 = vector.load %arg5[%c0_48, %c0_49] : memref<16x9xf32, #tpu.memory_space<vmem>>, vector<16x9xf32>
    %148 = vector.extract_strided_slice %4 {offsets = [8, 0], sizes = [1, 16], strides = [1, 1]} : vector<10x32xf32> to vector<1x16xf32>
    %149 = vector.extract_strided_slice %4 {offsets = [9, 0], sizes = [1, 8], strides = [1, 1]} : vector<10x32xf32> to vector<1x8xf32>
    %cst_50 = arith.constant dense<0.000000e+00> : vector<16x9xf32>
    %150 = tpu.matmul %146, %147, %cst_50 {dimension_numbers = #tpu.dot_dimension_numbers<[1], [0], [0], [1], [0, 0, 1, 1], [], []>} : vector<16x16xf32>, vector<16x9xf32>, vector<16x9xf32> -> vector<16x9xf32>
    %151 = vector.extract_strided_slice %150 {offsets = [0, 0], sizes = [16, 8], strides = [1, 1]} : vector<16x9xf32> to vector<16x8xf32>
    %152 = vector.extract_strided_slice %150 {offsets = [0, 8], sizes = [16, 1], strides = [1, 1]} : vector<16x9xf32> to vector<16x1xf32>
    %cst_51 = arith.constant dense<0.000000e+00> : vector<1x16xf32>
    %153 = tpu.matmul %148, %146, %cst_51 {dimension_numbers = #tpu.dot_dimension_numbers<[1], [1], [0], [0], [0, 0, 1, 0], [], []>} : vector<1x16xf32>, vector<16x16xf32>, vector<1x16xf32> -> vector<1x16xf32>
    %154 = vector.broadcast %152 : vector<16x1xf32> to vector<16x16xf32>
    %155 = vector.broadcast %153 : vector<1x16xf32> to vector<16x16xf32>
    %156 = arith.addf %154, %155 : vector<16x16xf32>
    %cst_52 = arith.constant 0.000000e+00 : f32
    %157 = vector.broadcast %cst_52 : f32 to vector<16x16xf32>
    %158 = arith.cmpf ogt, %156, %157 : vector<16x16xf32>
    %cst_53 = arith.constant 2.000000e-01 : f32
    %159 = vector.broadcast %cst_53 : f32 to vector<16x16xf32>
    %160 = arith.mulf %159, %156 : vector<16x16xf32>
    %161 = arith.select %158, %156, %160 : vector<16x16xi1>, vector<16x16xf32>
    %cst_54 = arith.constant -1.000000e+30 : f32
    %162 = vector.broadcast %cst_54 : f32 to vector<16x16xf32>
    %163 = arith.select %3, %161, %162 : vector<16x16xi1>, vector<16x16xf32>
    %cst_55 = arith.constant dense<0xFF800000> : vector<16xf32>
    %164 = vector.multi_reduction <maximumf>, %163, %cst_55 [1] : vector<16x16xf32> to vector<16xf32>
    %165 = vector.shape_cast %164 : vector<16xf32> to vector<16x1xf32>
    %166 = vector.broadcast %165 : vector<16x1xf32> to vector<16x16xf32>
    %167 = arith.subf %163, %166 : vector<16x16xf32>
    %168 = math.exp %167 : vector<16x16xf32>
    %cst_56 = arith.constant 0.000000e+00 : f32
    %169 = vector.broadcast %cst_56 : f32 to vector<16x16xf32>
    %170 = arith.select %3, %168, %169 : vector<16x16xi1>, vector<16x16xf32>
    %cst_57 = arith.constant dense<0.000000e+00> : vector<16xf32>
    %171 = vector.multi_reduction <add>, %170, %cst_57 [1] : vector<16x16xf32> to vector<16xf32>
    %172 = vector.shape_cast %171 : vector<16xf32> to vector<16x1xf32>
    %cst_58 = arith.constant 9.99999968E-21 : f32
    %173 = vector.broadcast %cst_58 : f32 to vector<16x1xf32>
    %174 = arith.maximumf %172, %173 : vector<16x1xf32>
    %175 = tpu.reciprocal %174 {approx = true} : vector<16x1xf32> -> vector<16x1xf32>
    %cst_59 = arith.constant dense<0.000000e+00> : vector<16x8xf32>
    %176 = tpu.matmul %170, %151, %cst_59 {dimension_numbers = #tpu.dot_dimension_numbers<[1], [0], [0], [1], [0, 0, 1, 1], [], []>} : vector<16x16xf32>, vector<16x8xf32>, vector<16x8xf32> -> vector<16x8xf32>
    %177 = vector.broadcast %175 : vector<16x1xf32> to vector<16x8xf32>
    %178 = arith.mulf %176, %177 : vector<16x8xf32>
    %179 = vector.broadcast %149 : vector<1x8xf32> to vector<16x8xf32>
    %180 = arith.addf %178, %179 : vector<16x8xf32>
    %c0_60 = arith.constant 0 : index
    %c0_61 = arith.constant 0 : index
    %c0_62 = arith.constant 0 : index
    %181 = vector.load %arg7[%c0_60, %c0_61, %c0_62] : memref<1x16x8xf32, #tpu.memory_space<vmem>>, vector<1x16x8xf32>
    %182 = vector.shape_cast %181 : vector<1x16x8xf32> to vector<16x8xf32>
    %183 = vector.shape_cast %180 : vector<16x8xf32> to vector<1x16x8xf32>
    tpu.vector_store %arg7[%c0_60, %c0_61, %c0_62], %183 {strides = array<i32>} : memref<1x16x8xf32, #tpu.memory_space<vmem>>, vector<1x16x8xf32>,
    return
  }
  func.func @transform_0(%arg0: i32) -> (i32, i32, i32) {
    %c0_i32 = arith.constant 0 : i32
    %c0_i32_0 = arith.constant 0 : i32
    %c0_i32_1 = arith.constant 0 : i32
    return %arg0, %c0_i32, %c0_i32_0 : i32, i32, i32
  }
  func.func @transform_1(%arg0: i32) -> (i32, i32, i32) {
    %c0_i32 = arith.constant 0 : i32
    %c0_i32_0 = arith.constant 0 : i32
    %c0_i32_1 = arith.constant 0 : i32
    return %arg0, %c0_i32, %c0_i32_0 : i32, i32, i32
  }
  func.func @transform_2(%arg0: i32) -> (i32, i32) {
    %c0_i32 = arith.constant 0 : i32
    %c0_i32_0 = arith.constant 0 : i32
    %c0_i32_1 = arith.constant 0 : i32
    return %c0_i32, %c0_i32_0 : i32, i32
  }
  func.func @transform_3(%arg0: i32) -> (i32, i32) {
    %c0_i32 = arith.constant 0 : i32
    %c0_i32_0 = arith.constant 0 : i32
    %c0_i32_1 = arith.constant 0 : i32
    return %c0_i32, %c0_i32_0 : i32, i32
  }
  func.func @transform_4(%arg0: i32) -> (i32, i32) {
    %c0_i32 = arith.constant 0 : i32
    %c0_i32_0 = arith.constant 0 : i32
    %c0_i32_1 = arith.constant 0 : i32
    return %c0_i32, %c0_i32_0 : i32, i32
  }
  func.func @transform_5(%arg0: i32) -> (i32, i32) {
    %c0_i32 = arith.constant 0 : i32
    %c0_i32_0 = arith.constant 0 : i32
    %c0_i32_1 = arith.constant 0 : i32
    return %c0_i32, %c0_i32_0 : i32, i32
  }
  func.func @transform_6(%arg0: i32) -> (i32, i32, i32) {
    %c0_i32 = arith.constant 0 : i32
    %c0_i32_0 = arith.constant 0 : i32
    %c0_i32_1 = arith.constant 0 : i32
    return %arg0, %c0_i32, %c0_i32_0 : i32, i32, i32
  }
}

</mosaic_0001>

<bundles_post_ra>
// kernel: gat_encoder_forward.1
= control target key start
LH: loop header
LB: loop body
LE: loop exit
PB: predicated region body
PF: predicated region fallthrough
CT: control target
= control target key end

     0   :  { %s1629_s21 = smov 0   ;;  %s1793_s0 = inlined_call_operand.vmem [shape: s32[2,16,16], index: 0, kind: input, shape index: {}]   ;;  %s1794_s1 = inlined_call_operand.vmem [shape: f32[2,16,8], index: 1, kind: input, shape index: {}]   ;;  %s1795_s2 = inlined_call_operand.vmem [shape: f32[8,33], index: 2, kind: input, shape index: {}]   ;;  %s1796_s3 = inlined_call_operand.vmem [shape: f32[32,17], index: 3, kind: input, shape index: {}]   ;;  %s1797_s4 = inlined_call_operand.vmem [shape: f32[16,9], index: 4, kind: input, shape index: {}]   ;;  %s1798_s5 = inlined_call_operand.vmem [shape: f32[10,32], index: 5, kind: input, shape index: {}]   ;;  %s1799_s6 = inlined_call_operand.vmem [shape: f32[2,16,8], index: 6, kind: output, shape index: {}]  }
   0x1 LB: > { %s1346_s22 = sadd.s32 4294967295, %s1586_s21   ;;  %p1350_p0 = scmp.ge.s32.totalorder %s1586_s21, 1  ;;  %s1586_s21 = sphi %s1629_s21, %s16_s21  }
   0x2   : > { %p222_p1 = scmp.lt.s32.totalorder %s1586_s21, 3 }
   0x4   : > { %p223_p2 = pnand %p1350_p0, %p222_p1 }
   0x5   : > { %v280_v0 = vld [vmem:[%s1795_s2] sm:$0xff] (!%p223_p2)  ;;  %p257_p3 = scmp.lt.s32.totalorder (!%p223_p2), %s1346_s22, 1  ;;  %v1588_v1 = vmov (!%p223_p2), 0.0|0.0   ;;  %vm1589_vm0 = vmmov (!%p223_p2), 0   ;;  %v1590_v2 = vmov (!%p223_p2), 0.0   ;;  %vm281_vm1 = vcmask (!%p223_p2), 64512  }
   0x6   : > { %226 = sbr.rel (%p223_p2) target bundleno = 2391 (0x957), region = 44  ;;  %1421 = vmatprep.subr.mxu0 (!%p223_p2), %v280_v0  ;;  %1486 = vmatprep.subr.bf16.mxu1 (!%p223_p2), %v1588_v1  ;;  %vm1488_vm2 = vmpackc.low (!%p223_p2), %vm281_vm1, %vm281_vm1  ;;  %v1657_v6 = vld [vmem:[%s1798_s5] sm:$0xff] (!%p223_p2)  ;;  %v1591_v7 = vmov (!%p223_p2), 32   ;;  %v446_v13 = vlaneseq (!%p223_p2)  ;;  %vm460_vm5 = vcmask (!%p223_p2), 130048   ;;  %v633_v44 = vld [vmem:[%s1796_s3 + $0x8] sm:$0xff] (!%p223_p2)  ;;  %vm586_vm8 = vcmask (!%p223_p2), 261120  }
   0x7   : > { %1422 = vmatpush3.msra.mxu0 (!%p223_p2), %v280_v0  ;;  %1430 = vmatprep.mubr.msk.f32.mxu1 (!%p223_p2), %vm1589_vm0, %v1590_v2  ;;  %v632_v43 = vld [vmem:[%s1796_s3] sm:$0xff] (!%p223_p2)  ;;  %v634_v45 = vld [vmem:[%s1796_s3 + $0x10] sm:$0xff] (!%p223_p2)  ;;  %v635_v47 = vld [vmem:[%s1796_s3 + $0x18] sm:$0xff] (!%p223_p2) }
   0x8   : > { %1536 = vset.pattern.permute.xlu0 (!%p223_p2), %v1591_v7  ;;  %v1663_v14 = vshrl.u32 (!%p223_p2), %v446_v13, 7  ;;  %v1494_v46 = vpack.c.bf16 (!%p223_p2), %v633_v44, %v632_v43  ;;  %v1498_v48 = vpack.c.bf16 (!%p223_p2), %v635_v47, %v634_v45  ;;  %vm1504_vm11 = vmpackc.low (!%p223_p2), %vm586_vm8, %vm586_vm8 }
   0xa   : > { %v1666_v15 = vsub.s32 (!%p223_p2), 0, %v1663_v14  ;;  %v570_v53 = vsub.s32 (!%p223_p2), 1, %v1663_v14  ;;  %v622_v47 = vsub.s32 (!%p223_p2), 2, %v1663_v14 }
   0xc   : > { %v571_v54 = vrot.slane (!%p223_p2), %v1657_v6, %v570_v53 }
   0xd   : > { %s1801_s22 = smov (!%p257_p3, %s1346_s22), 1 }
   0xe   : > { %s1643_s25 = sshll.u32 %s1801_s22, 4 }
   0xf   : > { %s266_s28 = scalar_lea.vmem %s1794_s1, %s1643_s25  ;;  %s261_s9 = scalar_lea.vmem %s1793_s0, %s1643_s25 }
  0x10   : > { %v278_v3 = vld [vmem:[%s266_s28] sm:$0xff]  ;;  %v279_v4 = vld [vmem:[%s266_s28 + $0x8] sm:$0xff]  ;;  %s271_s28 = scalar_lea.vmem %s1799_s6, %s1643_s25 }
  0x11   : > { %1423 = vmatprep.mubr.msk.f32.mxu0 %vm281_vm1, %v278_v3  ;;  %v1487_v5 = vpack.c.bf16 %v279_v4, %v278_v3  ;;  %v1673_v17 = vld [vmem:[%s261_s9] sm:$0xff]  ;;  %v1676_v21 = vld [vmem:[%s261_s9 + $0x8] sm:$0xff] }
  0x12   : > { %1424 = vmatmul.mubr.msk.f32.vlgmr.msra.gmra.mrb[0].mxu0 %vm281_vm1, %v279_v4  ;;  %vm274_vm3 = vcmp.ne.s32.totalorder %v1673_v17, 0  ;;  %vm275_vm6 = vcmp.ne.s32.totalorder %v1676_v21, 0 }
  0x13   : > { %1489 = vmatpush3.bf16.xpose.msk.msra.mxu1 %vm1488_vm2, %v1487_v5 }
  0x14   : > { %1502 = vmatprep.subr.bf16.mxu1 %v1588_v1 }
  0x1a   : > { %1431 = vmatmul.mubr.msk.f32.vlgmr.msra.gmra.mrb[0].mxu1 %vm281_vm1, %v1657_v6 }
  0x1b   : > { %1455 = vmatprep.mubr.msk.f32.mxu1 %vm1589_vm0, %v1590_v2 }
  0xe5   : > { %v1425_v8 = vpop.f32.mrb[0].mxu0 }
  0xe6   : > { %v354_v9 = vpop.f32.mrb[1].mxu0 }
  0xe7   : > { %v1490_v10 = vpack.c.bf16 %v1425_v8, %v354_v9  ;;  %438 = vperm.xlu0 %1536, %v354_v9  }
  0xe9   : > { %1491 = vmatprep.subr.bf16.mxu0 %v1490_v10 }
  0xea   : > { %1493 = vmatpush3.bf16.msra.mxu0 %v1490_v10 }
  0xeb   : > { %443 = vperm.xlu0 %1536, %v1425_v8   ;;  %1495 = vmatprep.subr.bf16.mxu0 %v1494_v46 }
  0xed   : > { %v432_v11 = vpop.f32.mrb[0].mxu1 }
  0xee   : > { %v1432_v12 = vpop.f32.mrb[1].mxu1  ;;  %v449_v16 = vrot.slane %v432_v11, %v1666_v15 }
 0x166   : > { %v439_v18 = vpop.permute.xlu0 %438 }
 0x167   : > { %v450_v19 = vadd.f32 %v449_v16, %v439_v18 }
 0x169   : > { %v454_v20 = vmul.f32 0.2, %v450_v19  ;;  %vm452_vm4 = vcmp.gt.f32.partialorder %v450_v19, 0.0 }
 0x16a   : > { %v444_v22 = vpop.permute.xlu0 %443 }
 0x16b   : > { %v451_v23 = vadd.f32 %v449_v16, %v444_v22  ;;  %v456_v24 = vsel %vm452_vm4, %v450_v19, %v454_v20 }
 0x16c   : > { %v458_v25 = vsel %vm274_vm3, %v456_v24, -1e+30 }
 0x16d   : > { %v455_v26 = vmul.f32 0.2, %v451_v23  ;;  %v461_v27 = vsel %vm460_vm5, %v458_v25, -inf  ;;  %vm453_vm7 = vcmp.gt.f32.partialorder %v451_v23, 0.0 }
 0x16e   : > { %462 = vmax.xlane.f32.xlu1 %v461_v27 }
 0x16f   : > { %v457_v28 = vsel %vm453_vm7, %v451_v23, %v455_v26 }
 0x170   : > { %v459_v29 = vsel %vm275_vm6, %v457_v28, -1e+30 }
 0x171   : > { %v464_v30 = vsel %vm460_vm5, %v459_v29, -inf }
 0x172   : > { %465 = vmax.xlane.f32.xlu1 %v464_v30 }
 0x1fb   : > { %v463_v31 = vpop.xlane.xlu1 %462 }
 0x1fc   : > { %v467_v32 = vsub.f32 %v458_v25, %v463_v31 }
 0x1fe   : > { %v469_v33 = vmul.f32 1.442695, %v467_v32 }
 0x1ff   : > { %v466_v34 = vpop.xlane.xlu1 %465 }
 0x200   : > { %1540 = vpow2.f32 %v469_v33  ;;  %v468_v35 = vsub.f32 %v459_v29, %v466_v34 }
 0x202   : > { %v471_v36 = vmul.f32 1.442695, %v468_v35 }
 0x204   : > { %1542 = vpow2.f32 %v471_v36 }
 0x20a   : > { %v1541_v37 = vpop.eup %1540 }
 0x20b   : > { %v473_v38 = vsel %vm274_vm3, %v1541_v37, 0.0 }
 0x20c   : > { %1437 = vmatprep.mubr.msk.f32.mxu0 %vm460_vm5, %v473_v38  ;;  %v475_v39 = vsel %vm460_vm5, %v473_v38, 0.0 }
 0x20d   : > { %476 = vadd.xlane.f32.xlu0 %v475_v39 }
 0x20e   : > { %v1543_v40 = vpop.eup %1542 }
 0x20f   : > { %v474_v41 = vsel %vm275_vm6, %v1543_v40, 0.0 }
 0x210   : > { %1438 = vmatmul.mubr.msk.f32.vlgmr.msra.gmra.mrb[2].mxu0 %vm460_vm5, %v474_v41  ;;  %v478_v42 = vsel %vm460_vm5, %v474_v41, 0.0 }
 0x211   : > { %479 = vadd.xlane.f32.xlu1 %v478_v42  ;;  %1497 = vmatpush3.bf16.msra.mxu0 %v1494_v46 }
 0x212   : > { %1499 = vmatprep.subr.bf16.mxu0 %v1498_v48 }
 0x215   : > { %1501 = vmatpush3.bf16.msra.mxu0 %v1498_v48  ;;  %v628_v48 = vsub.s32 3, %v1663_v14 }
 0x29a   : > { %v477_v50 = vpop.xlane.xlu0 %476 }
 0x29b   : > { %v481_v52 = vmax.f32 %v477_v50, 1e-20 }
 0x29e   : > { %v480_v49 = vpop.xlane.xlu1 %479 }
 0x29f   : > { %v482_v51 = vmax.f32 %v480_v49, 1e-20 }
 0x2a1   : > { %1544 = vrcp.f32 %v482_v51 }
 0x2a2   : > { %1546 = vrcp.f32 %v481_v52  ;;  %v629_v52 = vrot.slane %v1657_v6, %v628_v48 }
 0x2ab   : > { %v1545_v55 = vpop.eup %1544 }
 0x2ac   : > { %v1547_v57 = vpop.eup %1546 }
 0x2e3   : > { %v1439_v56 = vpop.f32.mrb[2].mxu0 }
 0x2e4   : > { %v567_v58 = vmul.f32 %v1545_v55, %v1439_v56  ;;  %v557_v59 = vpop.f32.mrb[3].mxu0 }
 0x2e5   : > { %v566_v60 = vmul.f32 %v1547_v57, %v557_v59  ;;  %v717_v59 = vrot.slane %v1657_v6, 4 }
 0x2e6   : > { %v573_v61 = vadd.f32 %v571_v54, %v567_v58 }
 0x2e7   : > { %v572_v62 = vadd.f32 %v571_v54, %v566_v60  ;;  %v1592_v60 = vmov 16  }
 0x2e8   : > { %v577_v63 = vmin.f32 %v573_v61, 0.0  ;;  %vm575_vm9 = vcmp.gt.f32.partialorder %v573_v61, 0.0  ;;  %1537 = vset.pattern.permute.xlu1 %v1592_v60 }
 0x2e9   : > { %v576_v0 = vmin.f32 %v572_v62, 0.0  ;;  %vm574_vm10 = vcmp.gt.f32.partialorder %v572_v62, 0.0 }
 0x2ea   : > { %v580_v3 = vmul.f32 1.442695, %v577_v63 }
 0x2eb   : > { %v578_v4 = vmul.f32 1.442695, %v576_v0 }
 0x2ec   : > { %1548 = vpow2.f32 %v580_v3 }
 0x2ed   : > { %1550 = vpow2.f32 %v578_v4 }
 0x2f6   : > { %v1549_v5 = vpop.eup %1548 }
 0x2f7   : > { %v1551_v7 = vpop.eup %1550  ;;  %v1365_v8 = vadd.f32 -1.0, %v1549_v5 }
 0x2f8   : > { %v1364_v9 = vadd.f32 -1.0, %v1551_v7 }
 0x2f9   : > { %v585_v10 = vsel %vm575_vm9, %v573_v61, %v1365_v8 }
 0x2fa   : > { %v588_v11 = vsel %vm586_vm8, %v585_v10, 0.0  ;;  %v584_v12 = vsel %vm574_vm10, %v572_v62, %v1364_v9 }
 0x2fb   : > { %v587_v13 = vsel %vm586_vm8, %v584_v12, 0.0 }
 0x2fc   : > { %v589_v16 = vadd.f32 %v588_v11, %v587_v13 }
 0x2fe   : > { %v590_v18 = vrot.slane %v589_v16, 4 }
 0x300   : > { %v591_v19 = vadd.f32 %v590_v18, %v589_v16 }
 0x302   : > { %v592_v20 = vrot.slane %v591_v19, 2 }
 0x304   : > { %v593_v22 = vadd.f32 %v592_v20, %v591_v19 }
 0x306   : > { %v594_v23 = vrot.slane %v593_v22, 1 }
 0x308   : > { %v595_v24 = vadd.f32 %v594_v23, %v593_v22 }
 0x30a   : > { %v596_v25 = vmul.f32 0.0625, %v595_v24 }
 0x30c   : > { %v597_v26 = vsub.f32 %v584_v12, %v596_v25  ;;  %v598_v27 = vsub.f32 %v585_v10, %v596_v25 }
 0x30e   : > { %v599_v28 = vmul.f32 %v597_v26, %v597_v26  ;;  %v600_v29 = vmul.f32 %v598_v27, %v598_v27 }
 0x310   : > { %v601_v30 = vsel %vm586_vm8, %v599_v28, 0.0  ;;  %v602_v31 = vsel %vm586_vm8, %v600_v29, 0.0 }
 0x311   : > { %v603_v32 = vadd.f32 %v602_v31, %v601_v30 }
 0x313   : > { %v604_v33 = vrot.slane %v603_v32, 4 }
 0x315   : > { %v605_v34 = vadd.f32 %v604_v33, %v603_v32  ;;  %v984_v33 = vld [vmem:[%s1797_s4] sm:$0xff] }
 0x317   : > { %v606_v35 = vrot.slane %v605_v34, 2 }
 0x319   : > { %v607_v36 = vadd.f32 %v606_v35, %v605_v34  ;;  %v985_v34 = vld [vmem:[%s1797_s4 + $0x8] sm:$0xff] }
 0x31a   : > { %v1510_v35 = vpack.c.bf16 %v985_v34, %v984_v33  ;;  %v974_v34 = vsub.s32 6, %v1663_v14 }
 0x31b   : > { %v608_v37 = vrot.slane %v607_v36, 1 }
 0x31d   : > { %v609_v38 = vadd.f32 %v608_v37, %v607_v36 }
 0x31f   : > { %v610_v39 = vmul.f32 0.0625, %v609_v38  ;;  %v1593_v38 = vmov 8  }
 0x320   : > { %1538 = vset.pattern.permute.xlu0 %v1593_v38 }
 0x321   : > { %v611_v40 = vadd.f32 1e-05, %v610_v39 }
 0x323   : > { %1552 = vrsqrt.f32 %v611_v40 }
 0x32d   : > { %v1553_v41 = vpop.eup %1552 }
 0x32e   : > { %v613_v42 = vmul.f32 %v1553_v41, %v1657_v6 }
 0x330   : > { %v615_v43 = vmul.f32 %v613_v42, %v613_v42  ;;  %v614_v46 = vmul.f32 %v613_v42, %v1657_v6 }
 0x332   : > { %v616_v44 = vmul.f32 %v615_v43, %v610_v39 }
 0x334   : > { %v617_v45 = vadd.f32 1e-05, %v616_v44 }
 0x336   : > { %1554 = vrsqrt.f32 %v617_v45 }
 0x340   : > { %v1555_v49 = vpop.eup %1554 }
 0x341   : > { %v619_v50 = vmul.f32 %v1555_v49, %v614_v46 }
 0x343   : > { %v623_v51 = vrot.slane %v619_v50, %v622_v47 }
 0x345   : > { %v624_v54 = vmul.f32 %v623_v51, %v597_v26  ;;  %v625_v55 = vmul.f32 %v623_v51, %v598_v27 }
 0x347   : > { %v630_v56 = vadd.f32 %v629_v52, %v624_v54  ;;  %v631_v57 = vadd.f32 %v629_v52, %v625_v55 }
 0x349   : > { %1448 = vmatprep.mubr.msk.f32.mxu0 %vm586_vm8, %v630_v56  ;;  %v1503_v58 = vpack.c.bf16 %v631_v57, %v630_v56 }
 0x34a   : > { %1449 = vmatmul.mubr.msk.f32.vlgmr.msra.gmra.mrb[4].mxu0 %vm586_vm8, %v631_v57 }
 0x34b   : > { %1505 = vmatpush3.bf16.xpose.msk.msra.mxu1 %vm1504_vm11, %v1503_v58 }
 0x34c   : > { %1511 = vmatprep.subr.bf16.mxu1 %v1510_v35 }
 0x352   : > { %1456 = vmatmul.mubr.msk.f32.vlgmr.msra.gmra.mrb[2].mxu1 %vm586_vm8, %v717_v59 }
 0x353   : > { %1513 = vmatpush3.bf16.msra.mxu1 %v1510_v35  ;;  %v980_v35 = vsub.s32 7, %v1663_v14 }
 0x41d   : > { %v1450_v61 = vpop.f32.mrb[4].mxu0 }
 0x41e   : > { %v708_v62 = vpop.f32.mrb[5].mxu0 }
 0x41f   : > { %v1506_v63 = vpack.c.bf16 %v1450_v61, %v708_v62  ;;  %792 = vperm.xlu1 %1537, %v708_v62  }
 0x421   : > { %1507 = vmatprep.subr.bf16.mxu0 %v1506_v63 }
 0x422   : > { %1509 = vmatpush3.bf16.msra.mxu0 %v1506_v63 }
 0x423   : > { %797 = vperm.xlu1 %1537, %v1450_v61   ;;  %1514 = vmatprep.subr.bf16.mxu0 %v1588_v1 }
 0x425   : > { %v786_v0 = vpop.f32.mrb[2].mxu1 }
 0x426   : > { %v1457_v3 = vpop.f32.mrb[3].mxu1  ;;  %v803_v4 = vrot.slane %v786_v0, %v1666_v15 }
 0x427   : > { %1539 = vset.pattern.permute.xlu1 %v1593_v38 }
 0x49e   : > { %v793_v5 = vpop.permute.xlu1 %792 }
 0x49f   : > { %v804_v7 = vadd.f32 %v803_v4, %v793_v5 }
 0x4a1   : > { %v808_v8 = vmul.f32 0.2, %v804_v7  ;;  %vm806_vm12 = vcmp.gt.f32.partialorder %v804_v7, 0.0 }
 0x4a2   : > { %v798_v9 = vpop.permute.xlu1 %797 }
 0x4a3   : > { %v805_v10 = vadd.f32 %v803_v4, %v798_v9  ;;  %v810_v11 = vsel %vm806_vm12, %v804_v7, %v808_v8 }
 0x4a4   : > { %v812_v12 = vsel %vm274_vm3, %v810_v11, -1e+30 }
 0x4a5   : > { %v809_v13 = vmul.f32 0.2, %v805_v10  ;;  %v814_v16 = vsel %vm460_vm5, %v812_v12, -inf  ;;  %vm807_vm13 = vcmp.gt.f32.partialorder %v805_v10, 0.0 }
 0x4a6   : > { %815 = vmax.xlane.f32.xlu1 %v814_v16 }
 0x4a7   : > { %v811_v1 = vsel %vm807_vm13, %v805_v10, %v809_v13 }
 0x4a8   : > { %v813_v18 = vsel %vm275_vm6, %v811_v1, -1e+30 }
 0x4a9   : > { %v817_v19 = vsel %vm460_vm5, %v813_v18, -inf }
 0x4aa   : > { %818 = vmax.xlane.f32.xlu0 %v817_v19 }
 0x533   : > { %v816_v20 = vpop.xlane.xlu1 %815 }
 0x534   : > { %v820_v22 = vsub.f32 %v812_v12, %v816_v20 }
 0x536   : > { %v822_v23 = vmul.f32 1.442695, %v820_v22 }
 0x537   : > { %v819_v24 = vpop.xlane.xlu0 %818 }
 0x538   : > { %1556 = vpow2.f32 %v822_v23  ;;  %v821_v25 = vsub.f32 %v813_v18, %v819_v24 }
 0x53a   : > { %v824_v26 = vmul.f32 1.442695, %v821_v25 }
 0x53c   : > { %1558 = vpow2.f32 %v824_v26 }
 0x542   : > { %v1557_v27 = vpop.eup %1556 }
 0x543   : > { %v826_v28 = vsel %vm274_vm3, %v1557_v27, 0.0 }
 0x544   : > { %1462 = vmatprep.mubr.msk.f32.mxu0 %vm460_vm5, %v826_v28  ;;  %v828_v29 = vsel %vm460_vm5, %v826_v28, 0.0 }
 0x545   : > { %829 = vadd.xlane.f32.xlu0 %v828_v29 }
 0x546   : > { %v1559_v30 = vpop.eup %1558 }
 0x547   : > { %v827_v31 = vsel %vm275_vm6, %v1559_v30, 0.0 }
 0x548   : > { %1463 = vmatmul.mubr.msk.f32.vlgmr.msra.gmra.mrb[6].mxu0 %vm460_vm5, %v827_v31  ;;  %v831_v32 = vsel %vm460_vm5, %v827_v31, 0.0 }
 0x549   : > { %832 = vadd.xlane.f32.xlu0 %v831_v32  ;;  %1476 = vmatprep.mubr.msk.f32.mxu0 %vm1589_vm0, %v1590_v2  ;;  %v923_v2 = vsub.s32 5, %v1663_v14  ;;  %vm1516_vm0 = vmpackc.low %vm460_vm5, %vm460_vm5 }
 0x54b   : > { %v924_v41 = vrot.slane %v1657_v6, %v923_v2 }
 0x5d2   : > { %v830_v36 = vpop.xlane.xlu0 %829 }
 0x5d3   : > { %v834_v40 = vmax.f32 %v830_v36, 1e-20 }
 0x5d6   : > { %v833_v37 = vpop.xlane.xlu0 %832 }
 0x5d7   : > { %v835_v39 = vmax.f32 %v833_v37, 1e-20 }
 0x5d9   : > { %1560 = vrcp.f32 %v835_v39  ;;  %v981_v39 = vrot.slane %v1657_v6, %v980_v35 }
 0x5da   : > { %1562 = vrcp.f32 %v834_v40 }
 0x5e3   : > { %v1561_v42 = vpop.eup %1560 }
 0x5e4   : > { %v1563_v44 = vpop.eup %1562 }
 0x61b   : > { %v1464_v43 = vpop.f32.mrb[6].mxu0 }
 0x61c   : > { %v920_v45 = vmul.f32 %v1561_v42, %v1464_v43  ;;  %v910_v46 = vpop.f32.mrb[7].mxu0 }
 0x61d   : > { %v919_v47 = vmul.f32 %v1563_v44, %v910_v46  ;;  %v277_v44 = vld [vmem:[%s1798_s5 + $0x8] sm:$0x3] }
 0x61e   : > { %v926_v48 = vadd.f32 %v924_v41, %v920_v45  ;;  %v1274_v17 = vrot.slane %v277_v44, %v570_v53 }
 0x61f   : > { %v925_v49 = vadd.f32 %v924_v41, %v919_v47 }
 0x620   : > { %v930_v50 = vmin.f32 %v926_v48, 0.0  ;;  %vm928_vm14 = vcmp.gt.f32.partialorder %v926_v48, 0.0 }
 0x621   : > { %v929_v51 = vmin.f32 %v925_v49, 0.0  ;;  %vm927_vm15 = vcmp.gt.f32.partialorder %v925_v49, 0.0 }
 0x622   : > { %v933_v52 = vmul.f32 1.442695, %v930_v50 }
 0x623   : > { %v931_v54 = vmul.f32 1.442695, %v929_v51 }
 0x624   : > { %1564 = vpow2.f32 %v933_v52 }
 0x625   : > { %1566 = vpow2.f32 %v931_v54 }
 0x62e   : > { %v1565_v55 = vpop.eup %1564 }
 0x62f   : > { %v1567_v56 = vpop.eup %1566  ;;  %v1374_v57 = vadd.f32 -1.0, %v1565_v55 }
 0x630   : > { %v1373_v58 = vadd.f32 -1.0, %v1567_v56 }
 0x631   : > { %v938_v59 = vsel %vm928_vm14, %v926_v48, %v1374_v57 }
 0x632   : > { %v940_v60 = vsel %vm460_vm5, %v938_v59, 0.0  ;;  %v937_v61 = vsel %vm927_vm15, %v925_v49, %v1373_v58 }
 0x633   : > { %v939_v62 = vsel %vm460_vm5, %v937_v61, 0.0 }
 0x634   : > { %v941_v63 = vadd.f32 %v940_v60, %v939_v62 }
 0x636   : > { %v942_v0 = vrot.slane %v941_v63, 4 }
 0x638   : > { %v943_v3 = vadd.f32 %v942_v0, %v941_v63 }
 0x63a   : > { %v944_v4 = vrot.slane %v943_v3, 2 }
 0x63c   : > { %v945_v5 = vadd.f32 %v944_v4, %v943_v3 }
 0x63e   : > { %v946_v7 = vrot.slane %v945_v5, 1 }
 0x640   : > { %v947_v8 = vadd.f32 %v946_v7, %v945_v5 }
 0x642   : > { %v948_v9 = vmul.f32 0.0625, %v947_v8 }
 0x644   : > { %v949_v10 = vsub.f32 %v937_v61, %v948_v9  ;;  %v950_v11 = vsub.f32 %v938_v59, %v948_v9 }
 0x646   : > { %v951_v12 = vmul.f32 %v949_v10, %v949_v10  ;;  %v952_v13 = vmul.f32 %v950_v11, %v950_v11 }
 0x648   : > { %v953_v16 = vsel %vm460_vm5, %v951_v12, 0.0  ;;  %v954_v1 = vsel %vm460_vm5, %v952_v13, 0.0 }
 0x649   : > { %v955_v18 = vadd.f32 %v954_v1, %v953_v16 }
 0x64b   : > { %v956_v19 = vrot.slane %v955_v18, 4 }
 0x64d   : > { %v957_v20 = vadd.f32 %v956_v19, %v955_v18 }
 0x64f   : > { %v958_v22 = vrot.slane %v957_v20, 2 }
 0x651   : > { %v959_v23 = vadd.f32 %v958_v22, %v957_v20 }
 0x653   : > { %v960_v24 = vrot.slane %v959_v23, 1 }
 0x655   : > { %v961_v25 = vadd.f32 %v960_v24, %v959_v23 }
 0x657   : > { %v962_v26 = vmul.f32 0.0625, %v961_v25 }
 0x659   : > { %v963_v27 = vadd.f32 1e-05, %v962_v26 }
 0x65b   : > { %1568 = vrsqrt.f32 %v963_v27 }
 0x665   : > { %v1569_v28 = vpop.eup %1568 }
 0x666   : > { %v965_v29 = vmul.f32 %v1569_v28, %v1657_v6 }
 0x668   : > { %v967_v30 = vmul.f32 %v965_v29, %v965_v29  ;;  %v966_v33 = vmul.f32 %v965_v29, %v1657_v6 }
 0x66a   : > { %v968_v31 = vmul.f32 %v967_v30, %v962_v26 }
 0x66c   : > { %v969_v32 = vadd.f32 1e-05, %v968_v31 }
 0x66e   : > { %1570 = vrsqrt.f32 %v969_v32 }
 0x678   : > { %v1571_v36 = vpop.eup %1570 }
 0x679   : > { %v971_v37 = vmul.f32 %v1571_v36, %v966_v33 }
 0x67b   : > { %v975_v38 = vrot.slane %v971_v37, %v974_v34 }
 0x67d   : > { %v976_v40 = vmul.f32 %v975_v38, %v949_v10  ;;  %v977_v2 = vmul.f32 %v975_v38, %v950_v11 }
 0x67f   : > { %v982_v41 = vadd.f32 %v981_v39, %v976_v40  ;;  %v983_v42 = vadd.f32 %v981_v39, %v977_v2 }
 0x681   : > { %1469 = vmatprep.mubr.msk.f32.mxu1 %vm460_vm5, %v982_v41  ;;  %v1515_v43 = vpack.c.bf16 %v983_v42, %v982_v41 }
 0x682   : > { %1470 = vmatmul.mubr.msk.f32.vlgmr.msra.gmra.mrb[4].mxu1 %vm460_vm5, %v983_v42 }
 0x683   : > { %1517 = vmatpush3.bf16.xpose.msk.msra.mxu0 %vm1516_vm0, %v1515_v43 }
 0x68a   : > { %1477 = vmatmul.mubr.msk.f32.vlgmr.msra.gmra.mrb[8].mxu0 %vm460_vm5, %v277_v44 }
 0x755   : > { %v1471_v6 = vpop.f32.mrb[4].mxu1 }
 0x756   : > { %1147 = vperm.xlu1 %1539, %v1471_v6   ;;  %v1058_v45 = vpop.f32.mrb[5].mxu1 }
 0x757   : > { %v1518_v46 = vpack.c.bf16 %v1471_v6, %v1058_v45  ;;  %1142 = vperm.xlu0 %1538, %v1058_v45  }
 0x759   : > { %1519 = vmatprep.subr.bf16.mxu1 %v1518_v46 }
 0x75a   : > { %1521 = vmatpush3.bf16.msra.mxu1 %v1518_v46 }
 0x75d   : > { %v1136_v47 = vpop.f32.mrb[8].mxu0 }
 0x75e   : > { %v1478_v48 = vpop.f32.mrb[9].mxu0  ;;  %v1153_v49 = vrot.slane %v1136_v47, %v1666_v15 }
 0x7d5   : > { %v1148_v50 = vpop.permute.xlu1 %1147 }
 0x7d6   : > { %v1155_v51 = vadd.f32 %v1153_v49, %v1148_v50  ;;  %v1143_v52 = vpop.permute.xlu0 %1142 }
 0x7d7   : > { %v1154_v54 = vadd.f32 %v1153_v49, %v1143_v52 }
 0x7d8   : > { %v1159_v55 = vmul.f32 0.2, %v1155_v51  ;;  %vm1157_vm2 = vcmp.gt.f32.partialorder %v1155_v51, 0.0 }
 0x7d9   : > { %v1158_v56 = vmul.f32 0.2, %v1154_v54  ;;  %vm1156_vm4 = vcmp.gt.f32.partialorder %v1154_v54, 0.0 }
 0x7da   : > { %v1161_v57 = vsel %vm1157_vm2, %v1155_v51, %v1159_v55 }
 0x7db   : > { %v1163_v58 = vsel %vm275_vm6, %v1161_v57, -1e+30  ;;  %v1160_v59 = vsel %vm1156_vm4, %v1154_v54, %v1158_v56 }
 0x7dc   : > { %v1167_v60 = vsel %vm460_vm5, %v1163_v58, -inf  ;;  %v1162_v61 = vsel %vm274_vm3, %v1160_v59, -1e+30 }
 0x7dd   : > { %1168 = vmax.xlane.f32.xlu0 %v1167_v60  ;;  %v1164_v15 = vsel %vm460_vm5, %v1162_v61, -inf }
 0x7de   : > { %1165 = vmax.xlane.f32.xlu1 %v1164_v15 }
 0x86a   : > { %v1169_v62 = vpop.xlane.xlu0 %1168 }
 0x86b   : > { %v1171_v63 = vsub.f32 %v1163_v58, %v1169_v62  ;;  %v1166_v0 = vpop.xlane.xlu1 %1165 }
 0x86c   : > { %v1170_v3 = vsub.f32 %v1162_v61, %v1166_v0 }
 0x86d   : > { %v1174_v4 = vmul.f32 1.442695, %v1171_v63 }
 0x86e   : > { %v1172_v5 = vmul.f32 1.442695, %v1170_v3 }
 0x86f   : > { %1572 = vpow2.f32 %v1174_v4 }
 0x870   : > { %1574 = vpow2.f32 %v1172_v5 }
 0x879   : > { %v1573_v7 = vpop.eup %1572 }
 0x87a   : > { %v1575_v8 = vpop.eup %1574  ;;  %v1177_v9 = vsel %vm275_vm6, %v1573_v7, 0.0 }
 0x87b   : > { %v1176_v10 = vsel %vm274_vm3, %v1575_v8, 0.0  ;;  %v1181_v11 = vsel %vm460_vm5, %v1177_v9, 0.0 }
 0x87c   : > { %1483 = vmatprep.mubr.msk.f32.mxu1 %vm460_vm5, %v1176_v10  ;;  %1182 = vadd.xlane.f32.xlu0 %v1181_v11  ;;  %v1178_v12 = vsel %vm460_vm5, %v1176_v10, 0.0 }
 0x87d   : > { %1179 = vadd.xlane.f32.xlu1 %v1178_v12  ;;  %1484 = vmatmul.mubr.msk.f32.vlgmr.msra.gmra.mrb[6].mxu1 %vm460_vm5, %v1177_v9 }
 0x909   : > { %v1183_v13 = vpop.xlane.xlu0 %1182 }
 0x90a   : > { %v1180_v16 = vpop.xlane.xlu1 %1179  ;;  %v1185_v1 = vmax.f32 %v1183_v13, 1e-20 }
 0x90b   : > { %v1184_v18 = vmax.f32 %v1180_v16, 1e-20 }
 0x90c   : > { %1576 = vrcp.f32 %v1185_v1 }
 0x90d   : > { %1578 = vrcp.f32 %v1184_v18 }
 0x916   : > { %v1577_v21 = vpop.eup %1576 }
 0x917   : > { %v1579_v20 = vpop.eup %1578 }
 0x950   : > { %v1485_v19 = vpop.f32.mrb[6].mxu1 }
 0x951   : > { %v1270_v22 = vmul.f32 %v1577_v21, %v1485_v19  ;;  %v1260_v23 = vpop.f32.mrb[7].mxu1 }
 0x952   : > { %v1269_v24 = vmul.f32 %v1579_v20, %v1260_v23 }
 0x953   : > { %v1276_v25 = vadd.f32 %v1274_v17, %v1270_v22 }
 0x954   : > { %v1275_v26 = vadd.f32 %v1274_v17, %v1269_v24 }
 0x955   : > { %1278 = vst.msk [vmem:[%s271_s28 + $0x8] sm:$0xff] %vm281_vm1, %v1276_v25 }
 0x956   : > { %1277 = vst.msk [vmem:[%s271_s28] sm:$0xff] %vm281_vm1, %v1275_v26 }
 0x957 PF: > { %s16_s21 = sadd.s32 1, %s1586_s21  }
 0x958   : > { %p13_p4 = scmp.ge.s32.totalorder %s16_s21, 4  }
 0x95a   :  { %15 = sbr.rel (!%p13_p4) target bundleno = 1 (0x1), region = 77 }

</bundles_post_ra>
